<compile_context>
chip_gen: v5e
topology: v5e:2x2
jax: 0.10.0
libtpu: 0.0.40
codegen_flags: <defaults>
</compile_context>

<pallas_src>
import functools
import math

import jax
import jax.numpy as jnp
from jax.experimental import pallas as pl
from jax.experimental.pallas import tpu as pltpu


def _round_up(x, m):
    return ((x + m - 1) // m) * m


# ---------------------------------------------------------------------------
# Kernel 1: fused K|V projection, computed once for all rows (hoisted out of
# the per-query-tile attention loop), emitted directly in the matmul dtype.
# ---------------------------------------------------------------------------
def _kv_proj_kernel(h_ref, wkv_ref, bkv_ref, kv_ref):
    kv = jnp.dot(h_ref[...], wkv_ref[...],
                 preferred_element_type=jnp.float32) + bkv_ref[...]
    kv_ref[...] = kv.astype(kv_ref.dtype)


# ---------------------------------------------------------------------------
# Kernel 2: attention.  grid = (q_tiles, passes, k_tiles).
# ---------------------------------------------------------------------------
def _attn_kernel(hq_ref, k_ref, v_ref, wq_ref, bq_ref, kbias_ref,
                 out_ref, eff_ref,
                 q_sc, m_sc, l_sc, acc_sc,
                 *, num_heads, d_k, hd_pad, two_pass, add_kbias):
    H = num_heads
    HD = H * d_k
    mm_dtype = k_ref.dtype
    p = pl.program_id(1)
    ki = pl.program_id(2)
    nk = pl.num_programs(2)

    def fill_q():
        # Fused lane-dense Q projection (Wq/bq already carry 1/sqrt(d_k)),
        # cast to the matmul dtype once and stored head-batched in scratch.
        q_all = jnp.dot(hq_ref[...], wq_ref[...],
                        preferred_element_type=jnp.float32) + bq_ref[...]
        for hd in range(H):
            q_sc[hd] = q_all[:, hd * d_k:(hd + 1) * d_k].astype(mm_dtype)

    def scores():
        # (H, tq, d_k) x (H, tk, d_k) -> (H, tq, tk); f32 MXU accumulation.
        s = jnp.einsum('hqd,hkd->hqk', q_sc[...], k_ref[...],
                       preferred_element_type=jnp.float32)
        if add_kbias:
            s = s + kbias_ref[...]        # additive 0 / -1e30 key-padding mask
        return s

    def store_out(acc):
        # acc: (H, tq, d_k) f32 -> one lane-dense (tq, hd_pad) store.
        out = jnp.concatenate([acc[hd] for hd in range(H)], axis=-1)
        if hd_pad > HD:
            out = jnp.concatenate(
                [out, jnp.zeros((out.shape[0], hd_pad - HD), out.dtype)],
                axis=-1)
        out_ref[...] = out.astype(out_ref.dtype)

    if not two_pass:
        # Whole key axis in one tile: direct softmax, one step per q tile.
        fill_q()
        s = scores()
        m = jnp.max(s, axis=-1, keepdims=True)
        e = jnp.exp(s - m)
        probs = e * (1.0 / jnp.sum(e, axis=-1, keepdims=True))   # exact divide
        eff_ref[...] = (jnp.sum(probs, axis=0) * (1.0 / H)).astype(eff_ref.dtype)
        pv = jnp.einsum('hqk,hkd->hqd', probs.astype(mm_dtype), v_ref[...],
                        preferred_element_type=jnp.float32)
        store_out(pv)
        return

    # ----------------- two-pass, key-tiled path (VMEM ~ O(tq*tk)) ----------
    @pl.when((p == 0) & (ki == 0))
    def _init():
        fill_q()
        m_sc[...] = jnp.full(m_sc.shape, -jnp.inf, m_sc.dtype)
        l_sc[...] = jnp.zeros(l_sc.shape, l_sc.dtype)
        acc_sc[...] = jnp.zeros(acc_sc.shape, acc_sc.dtype)

    s = scores()

    @pl.when(p == 0)                 # pass 0: running max / denominator
    def _stats():
        m_prev = m_sc[...]
        m_new = jnp.maximum(m_prev, jnp.max(s, axis=-1, keepdims=True))
        l_sc[...] = (l_sc[...] * jnp.exp(m_prev - m_new)
                     + jnp.sum(jnp.exp(s - m_new), axis=-1, keepdims=True))
        m_sc[...] = m_new

    @pl.when(p == 1)                 # pass 1: exact probs -> eff block + PV
    def _emit():
        probs = jnp.exp(s - m_sc[...]) * (1.0 / l_sc[...])       # exact divide
        eff_ref[...] = (jnp.sum(probs, axis=0) * (1.0 / H)).astype(eff_ref.dtype)
        acc_sc[...] = acc_sc[...] + jnp.einsum(
            'hqk,hkd->hqd', probs.astype(mm_dtype), v_ref[...],
            preferred_element_type=jnp.float32)

    @pl.when((p == 1) & (ki == nk - 1))
    def _finalize():
        store_out(acc_sc[...])


# ---------------------------------------------------------------------------
# Wrapper
# ---------------------------------------------------------------------------
def multi_head_attention(h, Wq, Wk, Wv, bq, bk, bv, num_heads, out_dim, *,
                         tq=128, tk=128, use_bf16=True,
                         eff_dtype=jnp.float32, vmem_limit_bytes=None):
    """h: [N, in_dim] f32.  Wx: [in_dim, num_heads*out_dim] (x @ W layout).
    bx: [num_heads*out_dim] or None.  Returns (out [N, H*d_k], eff [N, N])."""
    N, in_dim = h.shape
    H, d_k = num_heads, out_dim
    HD = H * d_k
    HD_pad = _round_up(HD, 128)
    mm_dtype = jnp.bfloat16 if use_bf16 else jnp.float32

    def _b(b):
        return jnp.zeros((HD,), jnp.float32) if b is None else b.astype(jnp.float32)
    bq, bk, bv = _b(bq), _b(bk), _b(bv)

    # Fold 1/sqrt(d_k) into the Q projection; fuse K|V weights (lane-dense).
    scale = 1.0 / math.sqrt(d_k)
    wq = Wq.astype(jnp.float32) * scale                           # (in_dim, HD)
    bq2 = (bq * scale).reshape(1, HD)
    wkv = jnp.concatenate([Wk, Wv], axis=1).astype(jnp.float32)   # (in_dim, 2HD)
    bkv2 = jnp.concatenate([bk, bv]).reshape(1, 2 * HD)

    # ---- tiling ------------------------------------------------------------
    # Query tiles: multiples of 16 (bf16 sublane pairs); split one big tile in
    # two so the "parallel" q axis can use both v7x TensorCores.
    if N > tq:
        tq_eff = _round_up(min(tq, N), 16)
    elif N >= 64:
        tq_eff = _round_up(-(-N // 2), 16)
    else:
        tq_eff = _round_up(max(N, 8), 16)
    n_q_pad = _round_up(N, tq_eff)

    # Key tiles: 128-lane multiples when tiled (eff block stays lane-dense);
    # otherwise one full-width tile (single-pass path).
    if N > tk:
        tk_eff = _round_up(tk, 128)
    else:
        tk_eff = _round_up(max(N, 8), 16)
    n_k_pad = _round_up(N, tk_eff)

    num_q = n_q_pad // tq_eff
    num_k = n_k_pad // tk_eff
    two_pass = num_k > 1
    num_p = 2 if two_pass else 1

    hf = h.astype(jnp.float32)
    h_q = jnp.pad(hf, ((0, n_q_pad - N), (0, 0))) if n_q_pad != N else hf
    h_k = jnp.pad(hf, ((0, n_k_pad - N), (0, 0))) if n_k_pad != N else hf

    # ---- hoisted K/V projection (computed once, emitted in mm_dtype) -------
    kv = pl.pallas_call(
        _kv_proj_kernel,
        out_shape=jax.ShapeDtypeStruct((n_k_pad, 2 * HD), mm_dtype),
        grid_spec=pltpu.PrefetchScalarGridSpec(
            num_scalar_prefetch=0,
            grid=(num_k,),
            in_specs=[
                pl.BlockSpec((tk_eff, in_dim), lambda i: (i, 0)),
                pl.BlockSpec((in_dim, 2 * HD), lambda i: (0, 0)),
                pl.BlockSpec((1, 2 * HD), lambda i: (0, 0)),
            ],
            out_specs=pl.BlockSpec((tk_eff, 2 * HD), lambda i: (i, 0)),
        ),
        compiler_params=pltpu.CompilerParams(
            dimension_semantics=("parallel",),
            vmem_limit_bytes=vmem_limit_bytes),
    )(h_k, wkv, bkv2)

    # Head-batched resident K/V layout (cheap one-time XLA reshuffle).
    k_heads = jnp.transpose(kv[:, :HD].reshape(n_k_pad, H, d_k), (1, 0, 2))
    v_heads = jnp.transpose(kv[:, HD:].reshape(n_k_pad, H, d_k), (1, 0, 2))

    # Additive key-padding mask (0 for valid keys, -1e30 for padded columns).
    add_kbias = n_k_pad != N
    kbias = jnp.where(jnp.arange(n_k_pad) < N, 0.0, -1e30)
    kbias = kbias.astype(jnp.float32).reshape(1, n_k_pad)

    kernel = functools.partial(
        _attn_kernel, num_heads=H, d_k=d_k, hd_pad=HD_pad,
        two_pass=two_pass, add_kbias=add_kbias)

    out_p, eff_p = pl.pallas_call(
        kernel,
        out_shape=(
            jax.ShapeDtypeStruct((n_q_pad, HD_pad), jnp.float32),
            jax.ShapeDtypeStruct((n_q_pad, n_k_pad), eff_dtype),
        ),
        grid_spec=pltpu.PrefetchScalarGridSpec(
            num_scalar_prefetch=0,
            grid=(num_q, num_p, num_k),
            in_specs=[
                pl.BlockSpec((tq_eff, in_dim), lambda qi, p, ki: (qi, 0)),
                pl.BlockSpec((H, tk_eff, d_k), lambda qi, p, ki: (0, ki, 0)),
                # V is only consumed in pass 1: hold its block at 0 in pass 0.
                pl.BlockSpec((H, tk_eff, d_k), lambda qi, p, ki: (0, p * ki, 0)),
                pl.BlockSpec((in_dim, HD), lambda qi, p, ki: (0, 0)),
                pl.BlockSpec((1, HD), lambda qi, p, ki: (0, 0)),
                pl.BlockSpec((1, tk_eff), lambda qi, p, ki: (0, ki)),
            ],
            out_specs=[
                pl.BlockSpec((tq_eff, HD_pad), lambda qi, p, ki: (qi, 0)),
                # eff blocks are only written in pass 1; park at (qi, 0) in pass 0.
                pl.BlockSpec((tq_eff, tk_eff), lambda qi, p, ki: (qi, p * ki)),
            ],
            scratch_shapes=[
                pltpu.VMEM((H, tq_eff, d_k), mm_dtype),     # Q (head-batched)
                pltpu.VMEM((H, tq_eff, 1), jnp.float32),    # running max
                pltpu.VMEM((H, tq_eff, 1), jnp.float32),    # running denom
                pltpu.VMEM((H, tq_eff, d_k), jnp.float32),  # PV accumulator
            ],
        ),
        compiler_params=pltpu.CompilerParams(
            dimension_semantics=("parallel", "arbitrary", "arbitrary"),
            vmem_limit_bytes=vmem_limit_bytes),
    )(h_q, k_heads, v_heads, wq, bq2, kbias)

    return out_p[:N, :HD], eff_p[:N, :N]


# ---------------------------------------------------------------------------
# Pure-JAX reference and tests
# ---------------------------------------------------------------------------
def _reference(h, Wq, Wk, Wv, bq, bk, bv, num_heads, out_dim):
    N = h.shape[0]
    d_k = out_dim
    Q = (h @ Wq + bq).reshape(N, num_heads, d_k).transpose(1, 0, 2)
    K = (h @ Wk + bk).reshape(N, num_heads, d_k).transpose(1, 0, 2)
    V = (h @ Wv + bv).reshape(N, num_heads, d_k).transpose(1, 0, 2)
    scores = jnp.einsum("hnd,hmd->hnm", Q, K) / math.sqrt(d_k)
    probs = jax.nn.softmax(scores, axis=-1)
    eff = probs.mean(axis=0)
    out = jnp.einsum("hnm,hmd->hnd", probs, V)
    out = out.transpose(1, 0, 2).reshape(N, num_heads * d_k)
    return out, eff


def _make_inputs(key, N, in_dim, num_heads, out_dim):
    kh, kq, kk, kv, kbq, kbk, kbv = jax.random.split(key, 7)
    HD = num_heads * out_dim
    h = jax.random.normal(kh, (N, in_dim), dtype=jnp.float32)
    Wq = jax.random.normal(kq, (in_dim, HD), dtype=jnp.float32) * 0.1
    Wk = jax.random.normal(kk, (in_dim, HD), dtype=jnp.float32) * 0.1
    Wv = jax.random.normal(kv, (in_dim, HD), dtype=jnp.float32) * 0.1
    bq = jax.random.normal(kbq, (HD,), dtype=jnp.float32) * 0.1
    bk = jax.random.normal(kbk, (HD,), dtype=jnp.float32) * 0.1
    bv = jax.random.normal(kbv, (HD,), dtype=jnp.float32) * 0.1
    return h, Wq, Wk, Wv, bq, bk, bv


def _check(name, got, want, atol, rtol):
    if not bool(jnp.allclose(got, want, atol=atol, rtol=rtol)):
        err = float(jnp.max(jnp.abs(got - want)))
        raise AssertionError(
            f"{name}: max abs err {err:.3e} (atol={atol}, rtol={rtol})")


if __name__ == "__main__":
    in_dim, out_dim, num_heads = 32, 16, 4

    # -- case 1: N=8 (module-sized), single key tile, padded rows/cols -------
    N = 8
    h, Wq, Wk, Wv, bq, bk, bv = _make_inputs(jax.random.PRNGKey(0), N, in_dim,
                                             num_heads, out_dim)
    ref_out, ref_eff = _reference(h, Wq, Wk, Wv, bq, bk, bv, num_heads, out_dim)

    out, eff = multi_head_attention(h, Wq, Wk, Wv, bq, bk, bv, num_heads,
                                    out_dim, use_bf16=True)
    out = jax.block_until_ready(out)
    eff = jax.block_until_ready(eff)
    assert out.shape == (N, num_heads * out_dim) and eff.shape == (N, N)
    _check("out(bf16,N=8)", out, ref_out, 5e-2, 5e-2)
    _check("eff(bf16,N=8)", eff, ref_eff, 5e-2, 5e-2)

    out32, eff32 = multi_head_attention(h, Wq, Wk, Wv, bq, bk, bv, num_heads,
                                        out_dim, use_bf16=False)
    out32 = jax.block_until_ready(out32)
    eff32 = jax.block_until_ready(eff32)
    _check("out(f32,N=8)", out32, ref_out, 2e-2, 2e-2)
    _check("eff(f32,N=8)", eff32, ref_eff, 2e-2, 2e-2)

    # -- case 2: N=20, non-aligned, single-pass path with key-padding mask ---
    N2 = 20
    inputs2 = _make_inputs(jax.random.PRNGKey(1), N2, in_dim, num_heads, out_dim)
    ref_out2, ref_eff2 = _reference(*inputs2, num_heads, out_dim)
    out2, eff2 = multi_head_attention(*inputs2, num_heads, out_dim,
                                      use_bf16=False)
    out2 = jax.block_until_ready(out2)
    eff2 = jax.block_until_ready(eff2)
    assert out2.shape == (N2, num_heads * out_dim) and eff2.shape == (N2, N2)
    _check("out(f32,N=20)", out2, ref_out2, 2e-2, 2e-2)
    _check("eff(f32,N=20)", eff2, ref_eff2, 2e-2, 2e-2)

    # -- case 3: N=200, multiple q and k tiles -> two-pass key-tiled path ----
    N3 = 200
    inputs3 = _make_inputs(jax.random.PRNGKey(2), N3, in_dim, num_heads, out_dim)
    ref_out3, ref_eff3 = _reference(*inputs3, num_heads, out_dim)

    out3, eff3 = multi_head_attention(*inputs3, num_heads, out_dim,
                                      tq=64, tk=128, use_bf16=False)
    out3 = jax.block_until_ready(out3)
    eff3 = jax.block_until_ready(eff3)
    assert out3.shape == (N3, num_heads * out_dim) and eff3.shape == (N3, N3)
    _check("out(f32,N=200)", out3, ref_out3, 2e-2, 2e-2)
    _check("eff(f32,N=200)", eff3, ref_eff3, 2e-2, 2e-2)

    out3b, eff3b = multi_head_attention(*inputs3, num_heads, out_dim,
                                        tq=64, tk=128, use_bf16=True)
    out3b = jax.block_until_ready(out3b)
    eff3b = jax.block_until_ready(eff3b)
    _check("out(bf16,N=200)", out3b, ref_out3, 5e-2, 5e-2)
    _check("eff(bf16,N=200)", eff3b, ref_eff3, 5e-2, 5e-2)

    print("KERNEL_OK")
</pallas_src>

<mosaic_0001>
module attributes {stable_mosaic.version = 11 : i64} {
  func.func @_kv_proj_kernel(%arg0: i32, %arg1: memref<16x32xf32, #tpu.memory_space<vmem>>, %arg2: memref<32x128xf32, #tpu.memory_space<vmem>>, %arg3: memref<1x128xf32, #tpu.memory_space<vmem>>, %arg4: memref<16x128xbf16, #tpu.memory_space<vmem>>) attributes {dimension_semantics = [#tpu.dimension_semantics<parallel>], iteration_bounds = array<i64: 1>, scalar_prefetch = 0 : i64, scratch_operands = 0 : i64, tpu.core_type = #tpu.core_type<tc>, window_params = [{transform_indices = @transform_0, window_bounds = array<i64: 16, 32>}, {pipeline_mode = #tpu.pipeline_mode<synchronous>, transform_indices = @transform_1, window_bounds = array<i64: 32, 128>}, {pipeline_mode = #tpu.pipeline_mode<synchronous>, transform_indices = @transform_2, window_bounds = array<i64: 1, 128>}, {transform_indices = @transform_3, window_bounds = array<i64: 16, 128>}]} {
    %c0 = arith.constant 0 : index
    %c0_0 = arith.constant 0 : index
    %0 = vector.load %arg1[%c0, %c0_0] : memref<16x32xf32, #tpu.memory_space<vmem>>, vector<16x32xf32>
    %c0_1 = arith.constant 0 : index
    %c0_2 = arith.constant 0 : index
    %1 = vector.load %arg2[%c0_1, %c0_2] : memref<32x128xf32, #tpu.memory_space<vmem>>, vector<32x128xf32>
    %cst = arith.constant dense<0.000000e+00> : vector<16x128xf32>
    %2 = tpu.matmul %0, %1, %cst {dimension_numbers = #tpu.dot_dimension_numbers<[1], [0], [0], [1], [0, 0, 1, 1], [], []>} : vector<16x32xf32>, vector<32x128xf32>, vector<16x128xf32> -> vector<16x128xf32>
    %c0_3 = arith.constant 0 : index
    %c0_4 = arith.constant 0 : index
    %3 = vector.load %arg3[%c0_3, %c0_4] : memref<1x128xf32, #tpu.memory_space<vmem>>, vector<1x128xf32>
    %4 = vector.broadcast %3 : vector<1x128xf32> to vector<16x128xf32>
    %5 = arith.addf %2, %4 : vector<16x128xf32>
    %6 = arith.truncf %5 : vector<16x128xf32> to vector<16x128xbf16>
    %c0_5 = arith.constant 0 : index
    %c0_6 = arith.constant 0 : index
    %7 = vector.load %arg4[%c0_5, %c0_6] : memref<16x128xbf16, #tpu.memory_space<vmem>>, vector<16x128xbf16>
    tpu.vector_store %arg4[%c0_5, %c0_6], %6 {strides = array<i32>} : memref<16x128xbf16, #tpu.memory_space<vmem>>, vector<16x128xbf16>,
    return
  }
  func.func @transform_0(%arg0: i32) -> (i32, i32) {
    %c0_i32 = arith.constant 0 : i32
    %c0_i32_0 = arith.constant 0 : i32
    return %arg0, %c0_i32 : i32, i32
  }
  func.func @transform_1(%arg0: i32) -> (i32, i32) {
    %c0_i32 = arith.constant 0 : i32
    %c0_i32_0 = arith.constant 0 : i32
    %c0_i32_1 = arith.constant 0 : i32
    return %c0_i32, %c0_i32_0 : i32, i32
  }
  func.func @transform_2(%arg0: i32) -> (i32, i32) {
    %c0_i32 = arith.constant 0 : i32
    %c0_i32_0 = arith.constant 0 : i32
    %c0_i32_1 = arith.constant 0 : i32
    return %c0_i32, %c0_i32_0 : i32, i32
  }
  func.func @transform_3(%arg0: i32) -> (i32, i32) {
    %c0_i32 = arith.constant 0 : i32
    %c0_i32_0 = arith.constant 0 : i32
    return %arg0, %c0_i32 : i32, i32
  }
}

</mosaic_0001>

<bundles_post_ra>
// kernel: tpu_custom_call.1
= control target key start
LH: loop header
LB: loop body
LE: loop exit
PB: predicated region body
PF: predicated region fallthrough
CT: control target
= control target key end

     0   :  { %8 = vsyncpa [#allocation3], 0  ;;  %s247_s0 = inlined_call_operand.hbm [shape: f32[16,32], index: 0, kind: input, shape index: {}]   ;;  %s248_s1 = inlined_call_operand.hbm [shape: f32[32,128], index: 1, kind: input, shape index: {}]   ;;  %s249_s2 = inlined_call_operand.vmem [shape: f32[1,128], index: 2, kind: input, shape index: {}]   ;;  %s250_s3 = inlined_call_operand.hbm [shape: bf16[16,128], index: 3, kind: output, shape index: {}]  }
   0x1   :  { %9 = vsyncpa [#allocation6], 0 }
   0x2   :  { %10 = vsyncpa [#allocation4], 0  ;;  %s15_s14 = sshll.u32 %s247_s0, 4  ;;  %s208_s15 = smov [#allocation2]   ;;  %s16_s14 = int_to_ptr.hbm [resolvable:$true] %s15_s14 }
   0x3   :  { %s17_s16 = sshll.u32 %s208_s15, 4  ;;  %s28_s19 = sshll.u32 %s248_s1, 4  ;;  %s18_s16 = int_to_ptr.vmem [resolvable:$true] %s17_s16  ;;  %s29_s19 = int_to_ptr.hbm [resolvable:$true] %s28_s19 }
   0x4   :  { %s209_s20 = smov 128   ;;  %s210_s21 = smov 8  }
   0x5   :  { %23 = dma.hbm_to_vmem [thread:$0]  %s16_s14, 256, %s18_s16, [#allocation3], %s209_s20, %s209_s20, %s210_s21  }
   0x6   :  { %s211_s22 = smov [#allocation5]  }
   0x7   :  { %s30_s23 = sshll.u32 %s211_s22, 4  ;;  %s31_s23 = int_to_ptr.vmem [resolvable:$true] %s30_s23 }
   0x8   :  { %36 = dma.hbm_to_vmem [thread:$0]  %s29_s19, 512, %s31_s23, [#allocation6], %s209_s20, %s209_s20, %s210_s21  }
   0x9   :  { %202 = dma.done.wait [#allocation3], 256  }
   0xa   :  { %203 = vsyncadd [#allocation3], 4294967040 }
   0xb   :  { %204 = dma.done.wait [#allocation6], 512  }
   0xc   :  { %205 = vsyncadd [#allocation6], 4294966784  ;;  %v52_v0 = vld [vmem:[#allocation5 + $0x18] sm:$0xff]  ;;  %v51_v1 = vld [vmem:[#allocation5 + $0x10] sm:$0xff]  ;;  %vm57_vm0 = vcmask 261120   ;;  %s212_s24 = smov [#allocation7]  }
   0xd   :  { %76 = vmatpush.msra.mxu0 %v52_v0  ;;  %118 = vmatpush.msra.mxu1 %v52_v0  ;;  %v50_v2 = vld [vmem:[#allocation5 + $0x8] sm:$0xff]  ;;  %v49_v3 = vld [vmem:[#allocation5] sm:$0xff]  ;;  %v47_v4 = vld [vmem:[#allocation2] sm:$0xff]  ;;  %s95_s25 = sshll.u32 %s212_s24, 4  ;;  %s97_s28 = sshll.u32 %s250_s3, 4  ;;  %s96_s25 = int_to_ptr.vmem [resolvable:$true] %s95_s25  ;;  %s98_s28 = int_to_ptr.hbm [resolvable:$true] %s97_s28 }
   0xe   :  { %v48_v5 = vld [vmem:[#allocation2 + $0x8] sm:$0xff]  ;;  %v129_v6 = vld [vmem:[%s249_s2] ss:$0 sm:$0xff]  ;;  %s213_s29 = smov 64   ;;  %s214_s30 = smov 4  }
   0xf   :  { %77 = vmatpush.msra.mxu0 %v51_v1  ;;  %119 = vmatpush.msra.mxu1 %v51_v1 }
  0x11   :  { %78 = vmatpush.msra.mxu0 %v50_v2  ;;  %120 = vmatpush.msra.mxu1 %v50_v2 }
  0x13   :  { %79 = vmatpush.msra.mxu0 %v49_v3  ;;  %121 = vmatpush.msra.mxu1 %v49_v3 }
  0x14   :  { %111 = vmatmul.msk.f32.vlgmr.msra.gmra.mxu0 %vm57_vm0, %v47_v4  ;;  %112 = vmatmul.msk.f32.vlgmr.msra.gmra.mxu1 %vm57_vm0, %v48_v5 }
  0x91   :  { %v81_v7 = vpop.f32.mrf.mxu0  ;;  %v84_v8 = vpop.f32.mrf.mxu1 }
  0x92   :  { %v82_v9 = vadd.f32 %v129_v6, %v81_v7  ;;  %v85_v10 = vadd.f32 %v129_v6, %v84_v8 }
  0x94   :  { %v116_v11 = vpack.c.bf16 %v85_v10, %v82_v9 }
  0x96   :  { %117 = vst [vmem:[#allocation7] sm:$0xff] %v116_v11  }
  0x97   :  { %103 = dma.vmem_to_hbm [thread:$0]  %s96_s25, 128, %s98_s28, [#allocation4], %s213_s29, %s213_s29, %s214_s30  }
  0x98   :  { %206 = dma.done.wait [#allocation4], 128  }
  0x99   :  { %207 = vsyncadd [#allocation4], 4294967168 }
  0x9a   :  { %108 = vsyncpa [#allocation3], 1 }
  0x9b   :  { %109 = vsyncpa [#allocation6], 1 }
  0x9c   :  { %110 = vsyncpa [#allocation4], 1 }

</bundles_post_ra>
